<compile_context>
chip_gen: v6e
topology: v6e:2x2x1
jax: 0.10.0
libtpu: 0.0.40
codegen_flags: <defaults>
</compile_context>

<pallas_src>
import jax
import jax.numpy as jnp
from jax.experimental import pallas as pl
from jax.experimental.pallas import tpu as pltpu

# Problem sizes (the module's forward hard-codes 14x14 images: seq=14, input=14)
N_STEPS = 14          # sequence length (rows of the 14x14 image)
N_INPUTS = 14         # features per step (columns)
N_NEURONS = 32        # RNN hidden size
N_OUTPUTS = 10        # intermediate_output_size in the module
N_LOGITS = 2          # output_size in the module
BATCH = 8             # example batch size (multiple of 8 keeps slices sublane-aligned)


def siamese_rnn_kernel(x_ref, w_ih_ref, w_hh_ref, w_fc_ref, w_out_ref,
                       out_ref, xp_ref):
    """All refs resident in VMEM (grid-less call).

    x_ref     : [T*2B, F]  f32  time-major stacked rows; step t occupies rows
                           [t*2B, (t+1)*2B): first B rows branch 1, next B branch 2
    w_ih_ref  : [F, H]     f32  (= RNN weight_ih_l0.T)
    w_hh_ref  : [H, H]     bf16 (= RNN weight_hh_l0.T, pre-cast once)
    w_fc_ref  : [H, 10]    f32  (= FC.weight.T)
    w_out_ref : [10, 4]    f32  (= [fcout.weight[:, :10].T | fcout.weight[:, 10:].T])
    out_ref   : [2B, 12]   f32  cols 0:10 -> FC outputs (rows 0:B=out1, B:2B=out2),
                                cols 10:12 of rows 0:B -> logits
    xp_ref    : [T*2B, H]  f32  scratch: hoisted input projection
    """
    NB = out_ref.shape[0]           # 2*B
    B = NB // 2
    T = x_ref.shape[0] // NB
    NL = w_out_ref.shape[1] // 2    # 2

    # --- Hoisted input projection: ONE MXU matmul, off the critical path. ---
    # Staged in VMEM scratch so the unrolled recurrence below only keeps h
    # (2 vregs) live and re-loads a [2B, H] sublane-aligned slice per step.
    xp_ref[...] = jnp.dot(x_ref[...], w_ih_ref[...],
                          preferred_element_type=jnp.float32)          # [T*2B, H]

    w_hh = w_hh_ref[...]                                               # bf16 [H, H]

    # --- Fused siamese recurrence: ONE 14-step chain over h:[2B, H]. ---
    # h_t = tanh(x_t @ W_ih^T + h_{t-1} @ W_hh^T), no bias, h_0 = 0.
    # Step 0 folded: tanh(x_0 + 0 @ W_hh) == tanh(x_0)  -> one fewer serial dot.
    # The serial dot runs with bf16 MXU operands; add + tanh stay f32 (v5e-safe).
    h = jnp.tanh(xp_ref[0:NB, :])                                      # [2B, H] f32
    for t in range(1, T):                                              # static, unrolled
        x_t = xp_ref[t * NB:(t + 1) * NB, :]                           # aligned slice load
        h = jnp.tanh(x_t + jnp.dot(h.astype(jnp.bfloat16), w_hh,
                                   preferred_element_type=jnp.float32))

    # FC projection for both branches at once.
    o = jnp.dot(h, w_fc_ref[...], preferred_element_type=jnp.float32)  # [2B, 10]

    # Fused fcout: z = o @ [W_a | W_b]; logits = z[:B,:2] (o1@W_a) + z[B:,2:] (o2@W_b)
    z = jnp.dot(o, w_out_ref[...], preferred_element_type=jnp.float32)  # [2B, 4]
    logits = z[:B, :NL] + z[B:, NL:]                                     # [B, 2]

    # Pack everything into one output slab -> single writeback DMA.
    logits_block = jnp.concatenate(
        [logits, jnp.zeros((B, NL), jnp.float32)], axis=0)               # [2B, 2]
    out_ref[...] = jnp.concatenate([o, logits_block], axis=1)            # [2B, 12]


def prepare_params(w_ih, w_hh, w_fc, w_out):
    """One-time (init-time) layout/dtype transform of the PyTorch-convention weights.

    w_ih [H, F], w_hh [H, H], w_fc [10, H], w_out [2, 20]  ->  kernel layout.
    W_hh is pre-cast to bf16 (MXU operand on the serial critical path); the two
    fcout halves are pre-concatenated into one [10, 4] weight so the kernel does
    a single fcout dot and never slices at a non-tile-aligned weight row.
    """
    w_ih = jnp.asarray(w_ih, jnp.float32)
    w_hh = jnp.asarray(w_hh, jnp.float32)
    w_fc = jnp.asarray(w_fc, jnp.float32)
    w_out = jnp.asarray(w_out, jnp.float32)
    w_out_cat = jnp.concatenate(
        [w_out[:, :N_OUTPUTS].T, w_out[:, N_OUTPUTS:].T], axis=1)       # [10, 4]
    return (w_ih.T,                        # [F, H]  f32
            w_hh.T.astype(jnp.bfloat16),   # [H, H]  bf16
            w_fc.T,                        # [H, 10] f32
            w_out_cat)                     # [10, 4] f32


@jax.jit
def image_rnn_forward(X, params):
    """X: [B, 2, 196] float32 (raw flattened image pairs).  params: prepare_params()."""
    w_ih_t, w_hh_bf16, w_fc_t, w_out_cat = params
    B = X.shape[0]
    assert B % 8 == 0, "batch must be a multiple of 8 for sublane-aligned slices"
    NB = 2 * B
    T, F = N_STEPS, N_INPUTS

    # Time-major / branch-interleaved restaging in the jitted wrapper (free layout
    # plumbing): row t*2B + c*B + b  <-  X[b, c, t*F:(t+1)*F].
    x_stacked = jnp.transpose(X.reshape(B, 2, T, F), (2, 1, 0, 3)).reshape(T * NB, F)

    vmem = pl.BlockSpec(memory_space=pltpu.MemorySpace.VMEM)
    packed = pl.pallas_call(
        siamese_rnn_kernel,
        out_shape=jax.ShapeDtypeStruct((NB, N_OUTPUTS + N_LOGITS), jnp.float32),
        in_specs=[vmem] * 5,
        out_specs=vmem,
        scratch_shapes=[pltpu.VMEM((T * NB, N_NEURONS), jnp.float32)],
    )(x_stacked, w_ih_t, w_hh_bf16, w_fc_t, w_out_cat)

    # PyTorch returns out1.view(-1, n_outputs), out2.view(-1, n_outputs), logits
    out1 = packed[:B, :N_OUTPUTS]
    out2 = packed[B:, :N_OUTPUTS]
    logits = packed[:B, N_OUTPUTS:N_OUTPUTS + N_LOGITS]
    return out1, out2, logits


def reference_forward(X, w_ih, w_hh, w_fc, w_out):
    """Pure-JAX f32 reference matching torch semantics (for verification)."""
    B = X.shape[0]

    def branch(Xk):
        xs = jnp.transpose(Xk.reshape(B, N_STEPS, N_INPUTS), (1, 0, 2))  # [T,B,14]
        h = jnp.zeros((B, N_NEURONS), jnp.float32)
        for t in range(N_STEPS):
            h = jnp.tanh(xs[t] @ w_ih.T + h @ w_hh.T)
        return h @ w_fc.T  # [B, 10]

    o1 = branch(X[:, 0, :])
    o2 = branch(X[:, 1, :])
    logits = jnp.concatenate([o1, o2], axis=1) @ w_out.T
    return o1, o2, logits


if __name__ == "__main__":
    key = jax.random.PRNGKey(0)
    k_x, k_ih, k_hh, k_fc, k_out = jax.random.split(key, 5)

    # Deterministic synthetic parameters (PyTorch-style uniform(-1/sqrt(H), 1/sqrt(H))).
    # nn.RNN(..., bias=False) and both Linears are bias=False -> no bias terms.
    bound = 1.0 / (N_NEURONS ** 0.5)
    w_ih = jax.random.uniform(k_ih, (N_NEURONS, N_INPUTS), jnp.float32, -bound, bound)
    w_hh = jax.random.uniform(k_hh, (N_NEURONS, N_NEURONS), jnp.float32, -bound, bound)
    w_fc = jax.random.uniform(k_fc, (N_OUTPUTS, N_NEURONS), jnp.float32, -bound, bound)
    w_out = jax.random.uniform(k_out, (N_LOGITS, 2 * N_OUTPUTS), jnp.float32, -bound, bound)

    # Input: pair of flattened 14x14 images per batch element.
    X = jax.random.normal(k_x, (BATCH, 2, N_STEPS * N_INPUTS), jnp.float32)

    # One-time parameter layout/dtype prep (kept out of the per-call path).
    params = prepare_params(w_ih, w_hh, w_fc, w_out)
    jax.block_until_ready(params)

    out1, out2, logits = image_rnn_forward(X, params)
    jax.block_until_ready((out1, out2, logits))

    r1, r2, rl = reference_forward(X, w_ih, w_hh, w_fc, w_out)
    assert out1.shape == (BATCH, N_OUTPUTS)
    assert out2.shape == (BATCH, N_OUTPUTS)
    assert logits.shape == (BATCH, N_LOGITS)
    # bf16 MXU operands on the recurrence -> relaxed tolerance vs the f32 reference.
    assert jnp.allclose(out1, r1, atol=2e-2, rtol=2e-2)
    assert jnp.allclose(out2, r2, atol=2e-2, rtol=2e-2)
    assert jnp.allclose(logits, rl, atol=2e-2, rtol=2e-2)

    print("KERNEL_OK")
</pallas_src>

<mosaic_0001>
module attributes {stable_mosaic.version = 11 : i64} {
  func.func @siamese_rnn_kernel(%arg0: memref<224x14xf32, #tpu.memory_space<vmem>>, %arg1: memref<14x32xf32, #tpu.memory_space<vmem>>, %arg2: memref<32x32xbf16, #tpu.memory_space<vmem>>, %arg3: memref<32x10xf32, #tpu.memory_space<vmem>>, %arg4: memref<10x4xf32, #tpu.memory_space<vmem>>, %arg5: memref<16x12xf32, #tpu.memory_space<vmem>>, %arg6: memref<224x32xf32, #tpu.memory_space<vmem>>) attributes {dimension_semantics = [], scalar_prefetch = 0 : i64, scratch_operands = 1 : i64, tpu.core_type = #tpu.core_type<tc>} {
    %c0 = arith.constant 0 : index
    %c0_0 = arith.constant 0 : index
    %0 = vector.load %arg0[%c0, %c0_0] : memref<224x14xf32, #tpu.memory_space<vmem>>, vector<224x14xf32>
    %c0_1 = arith.constant 0 : index
    %c0_2 = arith.constant 0 : index
    %1 = vector.load %arg1[%c0_1, %c0_2] : memref<14x32xf32, #tpu.memory_space<vmem>>, vector<14x32xf32>
    %cst = arith.constant dense<0.000000e+00> : vector<224x32xf32>
    %2 = tpu.matmul %0, %1, %cst {dimension_numbers = #tpu.dot_dimension_numbers<[1], [0], [0], [1], [0, 0, 1, 1], [], []>} : vector<224x14xf32>, vector<14x32xf32>, vector<224x32xf32> -> vector<224x32xf32>
    %c0_3 = arith.constant 0 : index
    %c0_4 = arith.constant 0 : index
    %3 = vector.load %arg6[%c0_3, %c0_4] : memref<224x32xf32, #tpu.memory_space<vmem>>, vector<224x32xf32>
    tpu.vector_store %arg6[%c0_3, %c0_4], %2 {strides = array<i32>} : memref<224x32xf32, #tpu.memory_space<vmem>>, vector<224x32xf32>,
    %c0_5 = arith.constant 0 : index
    %c0_6 = arith.constant 0 : index
    %4 = vector.load %arg2[%c0_5, %c0_6] : memref<32x32xbf16, #tpu.memory_space<vmem>>, vector<32x32xbf16>
    %c0_7 = arith.constant 0 : index
    %c0_8 = arith.constant 0 : index
    %5 = vector.load %arg6[%c0_7, %c0_8] : memref<224x32xf32, #tpu.memory_space<vmem>>, vector<16x32xf32>
    %6 = math.tanh %5 : vector<16x32xf32>
    %c16 = arith.constant 16 : index
    %c0_9 = arith.constant 0 : index
    %7 = vector.load %arg6[%c16, %c0_9] : memref<224x32xf32, #tpu.memory_space<vmem>>, vector<16x32xf32>
    %8 = arith.truncf %6 : vector<16x32xf32> to vector<16x32xbf16>
    %cst_10 = arith.constant dense<0.000000e+00> : vector<16x32xf32>
    %9 = tpu.matmul %8, %4, %cst_10 {dimension_numbers = #tpu.dot_dimension_numbers<[1], [0], [0], [1], [0, 0, 1, 1], [], []>} : vector<16x32xbf16>, vector<32x32xbf16>, vector<16x32xf32> -> vector<16x32xf32>
    %10 = arith.addf %7, %9 : vector<16x32xf32>
    %11 = math.tanh %10 : vector<16x32xf32>
    %c32 = arith.constant 32 : index
    %c0_11 = arith.constant 0 : index
    %12 = vector.load %arg6[%c32, %c0_11] : memref<224x32xf32, #tpu.memory_space<vmem>>, vector<16x32xf32>
    %13 = arith.truncf %11 : vector<16x32xf32> to vector<16x32xbf16>
    %cst_12 = arith.constant dense<0.000000e+00> : vector<16x32xf32>
    %14 = tpu.matmul %13, %4, %cst_12 {dimension_numbers = #tpu.dot_dimension_numbers<[1], [0], [0], [1], [0, 0, 1, 1], [], []>} : vector<16x32xbf16>, vector<32x32xbf16>, vector<16x32xf32> -> vector<16x32xf32>
    %15 = arith.addf %12, %14 : vector<16x32xf32>
    %16 = math.tanh %15 : vector<16x32xf32>
    %c48 = arith.constant 48 : index
    %c0_13 = arith.constant 0 : index
    %17 = vector.load %arg6[%c48, %c0_13] : memref<224x32xf32, #tpu.memory_space<vmem>>, vector<16x32xf32>
    %18 = arith.truncf %16 : vector<16x32xf32> to vector<16x32xbf16>
    %cst_14 = arith.constant dense<0.000000e+00> : vector<16x32xf32>
    %19 = tpu.matmul %18, %4, %cst_14 {dimension_numbers = #tpu.dot_dimension_numbers<[1], [0], [0], [1], [0, 0, 1, 1], [], []>} : vector<16x32xbf16>, vector<32x32xbf16>, vector<16x32xf32> -> vector<16x32xf32>
    %20 = arith.addf %17, %19 : vector<16x32xf32>
    %21 = math.tanh %20 : vector<16x32xf32>
    %c64 = arith.constant 64 : index
    %c0_15 = arith.constant 0 : index
    %22 = vector.load %arg6[%c64, %c0_15] : memref<224x32xf32, #tpu.memory_space<vmem>>, vector<16x32xf32>
    %23 = arith.truncf %21 : vector<16x32xf32> to vector<16x32xbf16>
    %cst_16 = arith.constant dense<0.000000e+00> : vector<16x32xf32>
    %24 = tpu.matmul %23, %4, %cst_16 {dimension_numbers = #tpu.dot_dimension_numbers<[1], [0], [0], [1], [0, 0, 1, 1], [], []>} : vector<16x32xbf16>, vector<32x32xbf16>, vector<16x32xf32> -> vector<16x32xf32>
    %25 = arith.addf %22, %24 : vector<16x32xf32>
    %26 = math.tanh %25 : vector<16x32xf32>
    %c80 = arith.constant 80 : index
    %c0_17 = arith.constant 0 : index
    %27 = vector.load %arg6[%c80, %c0_17] : memref<224x32xf32, #tpu.memory_space<vmem>>, vector<16x32xf32>
    %28 = arith.truncf %26 : vector<16x32xf32> to vector<16x32xbf16>
    %cst_18 = arith.constant dense<0.000000e+00> : vector<16x32xf32>
    %29 = tpu.matmul %28, %4, %cst_18 {dimension_numbers = #tpu.dot_dimension_numbers<[1], [0], [0], [1], [0, 0, 1, 1], [], []>} : vector<16x32xbf16>, vector<32x32xbf16>, vector<16x32xf32> -> vector<16x32xf32>
    %30 = arith.addf %27, %29 : vector<16x32xf32>
    %31 = math.tanh %30 : vector<16x32xf32>
    %c96 = arith.constant 96 : index
    %c0_19 = arith.constant 0 : index
    %32 = vector.load %arg6[%c96, %c0_19] : memref<224x32xf32, #tpu.memory_space<vmem>>, vector<16x32xf32>
    %33 = arith.truncf %31 : vector<16x32xf32> to vector<16x32xbf16>
    %cst_20 = arith.constant dense<0.000000e+00> : vector<16x32xf32>
    %34 = tpu.matmul %33, %4, %cst_20 {dimension_numbers = #tpu.dot_dimension_numbers<[1], [0], [0], [1], [0, 0, 1, 1], [], []>} : vector<16x32xbf16>, vector<32x32xbf16>, vector<16x32xf32> -> vector<16x32xf32>
    %35 = arith.addf %32, %34 : vector<16x32xf32>
    %36 = math.tanh %35 : vector<16x32xf32>
    %c112 = arith.constant 112 : index
    %c0_21 = arith.constant 0 : index
    %37 = vector.load %arg6[%c112, %c0_21] : memref<224x32xf32, #tpu.memory_space<vmem>>, vector<16x32xf32>
    %38 = arith.truncf %36 : vector<16x32xf32> to vector<16x32xbf16>
    %cst_22 = arith.constant dense<0.000000e+00> : vector<16x32xf32>
    %39 = tpu.matmul %38, %4, %cst_22 {dimension_numbers = #tpu.dot_dimension_numbers<[1], [0], [0], [1], [0, 0, 1, 1], [], []>} : vector<16x32xbf16>, vector<32x32xbf16>, vector<16x32xf32> -> vector<16x32xf32>
    %40 = arith.addf %37, %39 : vector<16x32xf32>
    %41 = math.tanh %40 : vector<16x32xf32>
    %c128 = arith.constant 128 : index
    %c0_23 = arith.constant 0 : index
    %42 = vector.load %arg6[%c128, %c0_23] : memref<224x32xf32, #tpu.memory_space<vmem>>, vector<16x32xf32>
    %43 = arith.truncf %41 : vector<16x32xf32> to vector<16x32xbf16>
    %cst_24 = arith.constant dense<0.000000e+00> : vector<16x32xf32>
    %44 = tpu.matmul %43, %4, %cst_24 {dimension_numbers = #tpu.dot_dimension_numbers<[1], [0], [0], [1], [0, 0, 1, 1], [], []>} : vector<16x32xbf16>, vector<32x32xbf16>, vector<16x32xf32> -> vector<16x32xf32>
    %45 = arith.addf %42, %44 : vector<16x32xf32>
    %46 = math.tanh %45 : vector<16x32xf32>
    %c144 = arith.constant 144 : index
    %c0_25 = arith.constant 0 : index
    %47 = vector.load %arg6[%c144, %c0_25] : memref<224x32xf32, #tpu.memory_space<vmem>>, vector<16x32xf32>
    %48 = arith.truncf %46 : vector<16x32xf32> to vector<16x32xbf16>
    %cst_26 = arith.constant dense<0.000000e+00> : vector<16x32xf32>
    %49 = tpu.matmul %48, %4, %cst_26 {dimension_numbers = #tpu.dot_dimension_numbers<[1], [0], [0], [1], [0, 0, 1, 1], [], []>} : vector<16x32xbf16>, vector<32x32xbf16>, vector<16x32xf32> -> vector<16x32xf32>
    %50 = arith.addf %47, %49 : vector<16x32xf32>
    %51 = math.tanh %50 : vector<16x32xf32>
    %c160 = arith.constant 160 : index
    %c0_27 = arith.constant 0 : index
    %52 = vector.load %arg6[%c160, %c0_27] : memref<224x32xf32, #tpu.memory_space<vmem>>, vector<16x32xf32>
    %53 = arith.truncf %51 : vector<16x32xf32> to vector<16x32xbf16>
    %cst_28 = arith.constant dense<0.000000e+00> : vector<16x32xf32>
    %54 = tpu.matmul %53, %4, %cst_28 {dimension_numbers = #tpu.dot_dimension_numbers<[1], [0], [0], [1], [0, 0, 1, 1], [], []>} : vector<16x32xbf16>, vector<32x32xbf16>, vector<16x32xf32> -> vector<16x32xf32>
    %55 = arith.addf %52, %54 : vector<16x32xf32>
    %56 = math.tanh %55 : vector<16x32xf32>
    %c176 = arith.constant 176 : index
    %c0_29 = arith.constant 0 : index
    %57 = vector.load %arg6[%c176, %c0_29] : memref<224x32xf32, #tpu.memory_space<vmem>>, vector<16x32xf32>
    %58 = arith.truncf %56 : vector<16x32xf32> to vector<16x32xbf16>
    %cst_30 = arith.constant dense<0.000000e+00> : vector<16x32xf32>
    %59 = tpu.matmul %58, %4, %cst_30 {dimension_numbers = #tpu.dot_dimension_numbers<[1], [0], [0], [1], [0, 0, 1, 1], [], []>} : vector<16x32xbf16>, vector<32x32xbf16>, vector<16x32xf32> -> vector<16x32xf32>
    %60 = arith.addf %57, %59 : vector<16x32xf32>
    %61 = math.tanh %60 : vector<16x32xf32>
    %c192 = arith.constant 192 : index
    %c0_31 = arith.constant 0 : index
    %62 = vector.load %arg6[%c192, %c0_31] : memref<224x32xf32, #tpu.memory_space<vmem>>, vector<16x32xf32>
    %63 = arith.truncf %61 : vector<16x32xf32> to vector<16x32xbf16>
    %cst_32 = arith.constant dense<0.000000e+00> : vector<16x32xf32>
    %64 = tpu.matmul %63, %4, %cst_32 {dimension_numbers = #tpu.dot_dimension_numbers<[1], [0], [0], [1], [0, 0, 1, 1], [], []>} : vector<16x32xbf16>, vector<32x32xbf16>, vector<16x32xf32> -> vector<16x32xf32>
    %65 = arith.addf %62, %64 : vector<16x32xf32>
    %66 = math.tanh %65 : vector<16x32xf32>
    %c208 = arith.constant 208 : index
    %c0_33 = arith.constant 0 : index
    %67 = vector.load %arg6[%c208, %c0_33] : memref<224x32xf32, #tpu.memory_space<vmem>>, vector<16x32xf32>
    %68 = arith.truncf %66 : vector<16x32xf32> to vector<16x32xbf16>
    %cst_34 = arith.constant dense<0.000000e+00> : vector<16x32xf32>
    %69 = tpu.matmul %68, %4, %cst_34 {dimension_numbers = #tpu.dot_dimension_numbers<[1], [0], [0], [1], [0, 0, 1, 1], [], []>} : vector<16x32xbf16>, vector<32x32xbf16>, vector<16x32xf32> -> vector<16x32xf32>
    %70 = arith.addf %67, %69 : vector<16x32xf32>
    %71 = math.tanh %70 : vector<16x32xf32>
    %c0_35 = arith.constant 0 : index
    %c0_36 = arith.constant 0 : index
    %72 = vector.load %arg3[%c0_35, %c0_36] : memref<32x10xf32, #tpu.memory_space<vmem>>, vector<32x10xf32>
    %cst_37 = arith.constant dense<0.000000e+00> : vector<16x10xf32>
    %73 = tpu.matmul %71, %72, %cst_37 {dimension_numbers = #tpu.dot_dimension_numbers<[1], [0], [0], [1], [0, 0, 1, 1], [], []>} : vector<16x32xf32>, vector<32x10xf32>, vector<16x10xf32> -> vector<16x10xf32>
    %c0_38 = arith.constant 0 : index
    %c0_39 = arith.constant 0 : index
    %74 = vector.load %arg4[%c0_38, %c0_39] : memref<10x4xf32, #tpu.memory_space<vmem>>, vector<10x4xf32>
    %cst_40 = arith.constant dense<0.000000e+00> : vector<16x4xf32>
    %75 = tpu.matmul %73, %74, %cst_40 {dimension_numbers = #tpu.dot_dimension_numbers<[1], [0], [0], [1], [0, 0, 1, 1], [], []>} : vector<16x10xf32>, vector<10x4xf32>, vector<16x4xf32> -> vector<16x4xf32>
    %76 = vector.extract_strided_slice %75 {offsets = [0, 0], sizes = [8, 2], strides = [1, 1]} : vector<16x4xf32> to vector<8x2xf32>
    %77 = vector.extract_strided_slice %75 {offsets = [8, 2], sizes = [8, 2], strides = [1, 1]} : vector<16x4xf32> to vector<8x2xf32>
    %78 = arith.addf %76, %77 : vector<8x2xf32>
    %cst_41 = arith.constant 0.000000e+00 : f32
    %79 = vector.broadcast %cst_41 : f32 to vector<8x2xf32>
    %80 = tpu.concatenate %78, %79 in 0 : vector<8x2xf32>, vector<8x2xf32> -> vector<16x2xf32>
    %81 = tpu.concatenate %73, %80 in 1 : vector<16x10xf32>, vector<16x2xf32> -> vector<16x12xf32>
    %c0_42 = arith.constant 0 : index
    %c0_43 = arith.constant 0 : index
    %82 = vector.load %arg5[%c0_42, %c0_43] : memref<16x12xf32, #tpu.memory_space<vmem>>, vector<16x12xf32>
    tpu.vector_store %arg5[%c0_42, %c0_43], %81 {strides = array<i32>} : memref<16x12xf32, #tpu.memory_space<vmem>>, vector<16x12xf32>,
    return
  }
}

</mosaic_0001>

<bundles_post_ra>
// kernel: image_rnn_forward.1
= control target key start
LH: loop header
LB: loop body
LE: loop exit
PB: predicated region body
PF: predicated region fallthrough
CT: control target
= control target key end

     0   :  { %vm136_vm0 = vcmask 1045504   ;;  %vm51_vm1 = vcmask 113664   ;;  %v1610_v6 = vmov 0.0   ;;  %vm1611_vm2 = vmmov 0   ;;  %s1612_s8 = smov 10   ;;  %s1928_s1 = inlined_call_operand.vmem [shape: f32[14,32], index: 1, kind: input, shape index: {}]   ;;  %s1929_s0 = inlined_call_operand.vmem [shape: f32[224,14], index: 0, kind: input, shape index: {}]   ;;  %s1930_s2 = inlined_call_operand.vmem [shape: bf16[32,32], index: 2, kind: input, shape index: {}]   ;;  %s1931_s3 = inlined_call_operand.vmem [shape: f32[32,10], index: 3, kind: input, shape index: {}]   ;;  %s1932_s4 = inlined_call_operand.vmem [shape: f32[10,4], index: 4, kind: input, shape index: {}]   ;;  %s1933_s5 = inlined_call_operand.vmem [shape: f32[16,12], index: 5, kind: output, shape index: {}]  }
   0x1   :  { %v50_v0 = vld [vmem:[%s1928_s1 + $0x8] sm:$0x3f]  ;;  %v49_v1 = vld [vmem:[%s1928_s1] sm:$0xff]  ;;  %v23_v4 = vld [vmem:[%s1929_s0 + $0x10] sm:$0xff]  ;;  %1426 = vmatprep.subr.bf16.mxu1 %v1610_v6  ;;  %1430 = vmatprep.mubr.msk.bf16.mxu1 %vm1611_vm2, %v1610_v6  ;;  %vm345_vm3 = vcmask 261120   ;;  %vm1151_vm4 = vcmask 1041408  }
   0x2   :  { %v21_v2 = vld [vmem:[%s1929_s0] sm:$0xff]  ;;  %1380 = vmatprep.subr.msk.mxu0 %vm136_vm0, %v50_v0  ;;  %v22_v3 = vld [vmem:[%s1929_s0 + $0x8] sm:$0xff]  ;;  %v24_v5 = vld [vmem:[%s1929_s0 + $0x18] sm:$0xff]  ;;  %1239 = vrot.lane.b32.xlu1 %v1610_v6, %s1612_s8  ;;  %vm1144_vm5 = vcmask 80896   ;;  %vm1245_vm6 = vcmask 97280  }
   0x3   :  { %1384 = vmatprep.mubr.msk.f32.mxu0 %vm51_vm1, %v21_v2  ;;  %1381 = vmatpush3.msk.msra.mxu0 %vm136_vm0, %v50_v0  ;;  %v1669_v7 = vld [vmem:[%s1930_s2 + $0x8] sm:$0xff]   ;;  %v1678_v8 = vld [vmem:[%s1930_s2] sm:$0xff]   ;;  %v27_v33 = vld [vmem:[%s1929_s0 + $0x30] sm:$0xff] }
   0x4   :  { %1382 = vmatprep.subr.mxu0 %v49_v1  ;;  %1427 = vmatpush3.bf16.msra.mxu1 %v1669_v7  ;;  %v25_v18 = vld [vmem:[%s1929_s0 + $0x20] sm:$0xff]  ;;  %v26_v19 = vld [vmem:[%s1929_s0 + $0x28] sm:$0xff]  ;;  %v28_v34 = vld [vmem:[%s1929_s0 + $0x38] sm:$0xff] }
   0x5   :  { %1383 = vmatpush3.msra.mxu0 %v49_v1  ;;  %1428 = vmatprep.subr.bf16.mxu1 %v1610_v6  ;;  %v29_v48 = vld [vmem:[%s1929_s0 + $0x40] sm:$0xff]  ;;  %v30_v49 = vld [vmem:[%s1929_s0 + $0x48] sm:$0xff]  ;;  %v31_v63 = vld [vmem:[%s1929_s0 + $0x50] sm:$0xff] }
   0x6   :  { %1385 = vmatmul.mubr.msk.f32.vlgmr.msra.gmra.mxu0 %vm51_vm1, %v22_v3  ;;  %1482 = vmatprep.subr.bf16.mxu0 %v1610_v6  ;;  %v32_v0 = vld [vmem:[%s1929_s0 + $0x58] sm:$0xff] }
   0x7   :  { %1387 = vmatprep.mubr.msk.f32.mxu0 %vm51_vm1, %v23_v4  ;;  %1483 = vmatpush3.bf16.msra.mxu0 %v1669_v7 }
   0x8   :  { %1484 = vmatprep.subr.bf16.mxu0 %v1610_v6  ;;  %1429 = vmatpush3.bf16.msra.mxu1 %v1678_v8 }
   0x9   :  { %1434 = vmatprep.subr.bf16.mxu1 %v1610_v6 }
   0xa   :  { %1388 = vmatmul.mubr.msk.f32.gmra.mxu0 %vm51_vm1, %v24_v5 }
   0xb   :  { %1485 = vmatpush3.bf16.msra.mxu0 %v1678_v8  ;;  %1390 = vmatprep.mubr.msk.f32.mxu0 %vm51_vm1, %v25_v18  ;;  %v34_v18 = vld [vmem:[%s1929_s0 + $0x68] sm:$0xff] }
   0xc   :  { %1498 = vmatprep.subr.bf16.mxu0 %v1610_v6 }
   0xe   :  { %1391 = vmatmul.mubr.msk.f32.gmra.mxu0 %vm51_vm1, %v26_v19 }
   0xf   :  { %1393 = vmatprep.mubr.msk.f32.mxu0 %vm51_vm1, %v27_v33  ;;  %v36_v33 = vld [vmem:[%s1929_s0 + $0x78] sm:$0xff] }
  0x12   :  { %1394 = vmatmul.mubr.msk.f32.gmra.mxu0 %vm51_vm1, %v28_v34  ;;  %v37_v34 = vld [vmem:[%s1929_s0 + $0x80] sm:$0xff] }
  0x13   :  { %1396 = vmatprep.mubr.msk.f32.mxu0 %vm51_vm1, %v29_v48 }
  0x16   :  { %1397 = vmatmul.mubr.msk.f32.gmra.mxu0 %vm51_vm1, %v30_v49 }
  0x17   :  { %1399 = vmatprep.mubr.msk.f32.mxu0 %vm51_vm1, %v31_v63 }
  0x1a   :  { %1400 = vmatmul.mubr.msk.f32.gmra.mxu0 %vm51_vm1, %v32_v0 }
  0xc6   :  { %v1386_v9 = vpop.f32.mrf.mxu0 }
  0xc7   :  { %347 = vst.msk [vmem:[#allocation2 + $0x8] sm:$0xff] %vm345_vm3, %v1386_v9 }
  0xc8   :  { %v206_v10 = vpop.f32.mrf.mxu0 }
  0xc9   :  { %346 = vst.msk [vmem:[#allocation2] sm:$0xff] %vm345_vm3, %v206_v10 }
  0xca   :  { %v1389_v16 = vpop.f32.mrf.mxu0 }
  0xcb   :  { %349 = vst.msk [vmem:[#allocation2 + $0x18] sm:$0xff] %vm345_vm3, %v1389_v16 }
  0xcc   :  { %v216_v17 = vpop.f32.mrf.mxu0 }
  0xcd   :  { %348 = vst.msk [vmem:[#allocation2 + $0x10] sm:$0xff] %vm345_vm3, %v216_v17  ;;  %v33_v17 = vld [vmem:[%s1929_s0 + $0x60] sm:$0xff] }
  0xce   :  { %v379_v11 = vld [vmem:[#allocation2 + $0x8] sm:$0xff]  ;;  %v1392_v31 = vpop.f32.mrf.mxu0  ;;  %1402 = vmatprep.mubr.msk.f32.mxu0 %vm51_vm1, %v33_v17 }
  0xcf   :  { %1554 = vtanh.f32 %v379_v11  ;;  %351 = vst.msk [vmem:[#allocation2 + $0x28] sm:$0xff] %vm345_vm3, %v1392_v31  ;;  %1403 = vmatmul.mubr.msk.f32.gmra.mxu0 %vm51_vm1, %v34_v18 }
  0xd0   :  { %v378_v12 = vld [vmem:[#allocation2] sm:$0xff]  ;;  %v226_v32 = vpop.f32.mrf.mxu0 }
  0xd1   :  { %1556 = vtanh.f32 %v378_v12  ;;  %350 = vst.msk [vmem:[#allocation2 + $0x20] sm:$0xff] %vm345_vm3, %v226_v32  ;;  %v35_v32 = vld [vmem:[%s1929_s0 + $0x70] sm:$0xff] }
  0xd2   :  { %v383_v24 = vld [vmem:[#allocation2 + $0x18] sm:$0xff]  ;;  %v1395_v46 = vpop.f32.mrf.mxu0  ;;  %1405 = vmatprep.mubr.msk.f32.mxu0 %vm51_vm1, %v35_v32 }
  0xd3   :  { %353 = vst.msk [vmem:[#allocation2 + $0x38] sm:$0xff] %vm345_vm3, %v1395_v46  ;;  %1406 = vmatmul.mubr.msk.f32.gmra.mxu0 %vm51_vm1, %v36_v33 }
  0xd4   :  { %v382_v20 = vld [vmem:[#allocation2 + $0x10] sm:$0xff]  ;;  %v236_v47 = vpop.f32.mrf.mxu0  ;;  %1408 = vmatprep.mubr.msk.f32.mxu0 %vm51_vm1, %v37_v34 }
  0xd5   :  { %352 = vst.msk [vmem:[#allocation2 + $0x30] sm:$0xff] %vm345_vm3, %v236_v47 }
  0xd6   :  { %v446_v39 = vld [vmem:[#allocation2 + $0x28] sm:$0xff]  ;;  %v1398_v61 = vpop.f32.mrf.mxu0 }
  0xd7   :  { %355 = vst.msk [vmem:[#allocation2 + $0x48] sm:$0xff] %vm345_vm3, %v1398_v61 }
  0xd8   :  { %v445_v35 = vld [vmem:[#allocation2 + $0x20] sm:$0xff]  ;;  %v246_v62 = vpop.f32.mrf.mxu0 }
  0xd9   :  { %354 = vst.msk [vmem:[#allocation2 + $0x40] sm:$0xff] %vm345_vm3, %v246_v62 }
  0xda   :  { %v497_v54 = vld [vmem:[#allocation2 + $0x38] sm:$0xff] }
  0xdc   :  { %v1555_v13 = vpop.eup %1554  ;;  %v496_v50 = vld [vmem:[#allocation2 + $0x30] sm:$0xff] }
  0xde   :  { %v1557_v14 = vpop.eup %1556  ;;  %v548_v5 = vld [vmem:[#allocation2 + $0x48] sm:$0xff] }
  0xdf   :  { %v384_v15 = vpack.c.bf16 %v1555_v13, %v1557_v14 }
  0xe0   :  { %v547_v1 = vld [vmem:[#allocation2 + $0x40] sm:$0xff] }
  0xe1   :  { %1431 = vmatmul.mubr.msk.bf16.vlgmr.msra.gmra.mxu1 %vm345_vm3, %v384_v15  ;;  %v1401_v15 = vpop.f32.mrf.mxu0 }
  0xe2   :  { %1435 = vmatpush3.bf16.msra.mxu1 %v1669_v7  ;;  %1438 = vmatprep.mubr.msk.bf16.mxu1 %vm1611_vm2, %v1610_v6  ;;  %357 = vst.msk [vmem:[#allocation2 + $0x58] sm:$0xff] %vm345_vm3, %v1401_v15 }
  0xe3   :  { %1436 = vmatprep.subr.bf16.mxu1 %v1610_v6  ;;  %v256_v16 = vpop.f32.mrf.mxu0 }
  0xe4   :  { %356 = vst.msk [vmem:[#allocation2 + $0x50] sm:$0xff] %vm345_vm3, %v256_v16 }
  0xe6   :  { %1437 = vmatpush3.bf16.msra.mxu1 %v1678_v8 }
  0xe7   :  { %1442 = vmatprep.subr.bf16.mxu1 %v1610_v6 }
  0xeb   :  { %v598_v19 = vld [vmem:[#allocation2 + $0x50] sm:$0xff] }
 0x1a1   :  { %v434_v21 = vpop.f32.mrf.mxu1 }
 0x1a2   :  { %v441_v22 = vadd.f32 %v434_v21, %v382_v20 }
 0x1a3   :  { %v1432_v23 = vpop.f32.mrf.mxu1 }
 0x1a4   :  { %1558 = vtanh.f32 %v441_v22  ;;  %v599_v23 = vld [vmem:[#allocation2 + $0x58] sm:$0xff] }
 0x1a5   :  { %v437_v25 = vpop.f32.mrf.mxu1 }
 0x1a6   :  { %v442_v26 = vadd.f32 %v437_v25, %v383_v24 }
 0x1a7   :  { %v1433_v27 = vpop.f32.mrf.mxu1 }
 0x1a8   :  { %1560 = vtanh.f32 %v442_v26 }
 0x1b1   :  { %v1559_v28 = vpop.eup %1558 }
 0x1b5   :  { %v1561_v29 = vpop.eup %1560 }
 0x1b6   :  { %v447_v30 = vpack.c.bf16 %v1561_v29, %v1559_v28 }
 0x1b8   :  { %1439 = vmatmul.mubr.msk.bf16.vlgmr.msra.gmra.mxu1 %vm345_vm3, %v447_v30  ;;  %v1404_v30 = vpop.f32.mrf.mxu0 }
 0x1b9   :  { %1443 = vmatpush3.bf16.msra.mxu1 %v1669_v7  ;;  %1446 = vmatprep.mubr.msk.bf16.mxu1 %vm1611_vm2, %v1610_v6  ;;  %359 = vst.msk [vmem:[#allocation2 + $0x68] sm:$0xff] %vm345_vm3, %v1404_v30 }
 0x1ba   :  { %1444 = vmatprep.subr.bf16.mxu1 %v1610_v6  ;;  %v266_v31 = vpop.f32.mrf.mxu0 }
 0x1bb   :  { %358 = vst.msk [vmem:[#allocation2 + $0x60] sm:$0xff] %vm345_vm3, %v266_v31 }
 0x1bc   :  { %v1407_v48 = vpop.f32.mrf.mxu0 }
 0x1bd   :  { %1445 = vmatpush3.bf16.msra.mxu1 %v1678_v8  ;;  %361 = vst.msk [vmem:[#allocation2 + $0x78] sm:$0xff] %vm345_vm3, %v1407_v48 }
 0x1be   :  { %1450 = vmatprep.subr.bf16.mxu1 %v1610_v6  ;;  %v276_v49 = vpop.f32.mrf.mxu0 }
 0x1bf   :  { %360 = vst.msk [vmem:[#allocation2 + $0x70] sm:$0xff] %vm345_vm3, %v276_v49 }
 0x1c6   :  { %v700_v61 = vld [vmem:[#allocation2 + $0x70] sm:$0xff] }
 0x278   :  { %v485_v36 = vpop.f32.mrf.mxu1 }
 0x279   :  { %v492_v37 = vadd.f32 %v485_v36, %v445_v35  ;;  %v38_v35 = vld [vmem:[%s1929_s0 + $0x88] sm:$0xff]  ;;  %v39_v36 = vld [vmem:[%s1929_s0 + $0x90] sm:$0xff] }
 0x27a   :  { %v1440_v38 = vpop.f32.mrf.mxu1  ;;  %1409 = vmatmul.mubr.msk.f32.gmra.mxu0 %vm51_vm1, %v38_v35 }
 0x27b   :  { %1562 = vtanh.f32 %v492_v37  ;;  %1411 = vmatprep.mubr.msk.f32.mxu0 %vm51_vm1, %v39_v36  ;;  %v649_v37 = vld [vmem:[#allocation2 + $0x60] sm:$0xff] }
 0x27c   :  { %v488_v40 = vpop.f32.mrf.mxu1 }
 0x27d   :  { %v493_v41 = vadd.f32 %v488_v40, %v446_v39 }
 0x27e   :  { %v1441_v42 = vpop.f32.mrf.mxu1 }
 0x27f   :  { %1564 = vtanh.f32 %v493_v41  ;;  %v650_v41 = vld [vmem:[#allocation2 + $0x68] sm:$0xff] }
 0x288   :  { %v1563_v43 = vpop.eup %1562 }
 0x28c   :  { %v1565_v44 = vpop.eup %1564 }
 0x28d   :  { %v498_v45 = vpack.c.bf16 %v1565_v44, %v1563_v43 }
 0x28f   :  { %1447 = vmatmul.mubr.msk.bf16.vlgmr.msra.gmra.mxu1 %vm345_vm3, %v498_v45 }
 0x290   :  { %1451 = vmatpush3.bf16.msra.mxu1 %v1669_v7  ;;  %1454 = vmatprep.mubr.msk.bf16.mxu1 %vm1611_vm2, %v1610_v6 }
 0x291   :  { %1452 = vmatprep.subr.bf16.mxu1 %v1610_v6 }
 0x294   :  { %1453 = vmatpush3.bf16.msra.mxu1 %v1678_v8 }
 0x295   :  { %1458 = vmatprep.subr.bf16.mxu1 %v1610_v6 }
 0x34f   :  { %v536_v51 = vpop.f32.mrf.mxu1 }
 0x350   :  { %v543_v52 = vadd.f32 %v536_v51, %v496_v50  ;;  %v40_v50 = vld [vmem:[%s1929_s0 + $0x98] sm:$0xff]  ;;  %v41_v51 = vld [vmem:[%s1929_s0 + $0xa0] sm:$0xff] }
 0x351   :  { %v1448_v53 = vpop.f32.mrf.mxu1  ;;  %1412 = vmatmul.mubr.msk.f32.gmra.mxu0 %vm51_vm1, %v40_v50 }
 0x352   :  { %1566 = vtanh.f32 %v543_v52  ;;  %1414 = vmatprep.mubr.msk.f32.mxu0 %vm51_vm1, %v41_v51  ;;  %v42_v52 = vld [vmem:[%s1929_s0 + $0xa8] sm:$0xff]  ;;  %v43_v53 = vld [vmem:[%s1929_s0 + $0xb0] sm:$0xff] }
 0x353   :  { %v539_v55 = vpop.f32.mrf.mxu1 }
 0x354   :  { %v544_v56 = vadd.f32 %v539_v55, %v497_v54  ;;  %v44_v54 = vld [vmem:[%s1929_s0 + $0xb8] sm:$0xff]  ;;  %v45_v55 = vld [vmem:[%s1929_s0 + $0xc0] sm:$0xff] }
 0x355   :  { %v1449_v57 = vpop.f32.mrf.mxu1  ;;  %1415 = vmatmul.mubr.msk.f32.gmra.mxu0 %vm51_vm1, %v42_v52 }
 0x356   :  { %1568 = vtanh.f32 %v544_v56  ;;  %1417 = vmatprep.mubr.msk.f32.mxu0 %vm51_vm1, %v43_v53  ;;  %v46_v56 = vld [vmem:[%s1929_s0 + $0xc8] sm:$0xff]  ;;  %v47_v57 = vld [vmem:[%s1929_s0 + $0xd0] sm:$0xff] }
 0x359   :  { %1418 = vmatmul.mubr.msk.f32.gmra.mxu0 %vm51_vm1, %v44_v54 }
 0x35a   :  { %1420 = vmatprep.mubr.msk.f32.mxu0 %vm51_vm1, %v45_v55 }
 0x35d   :  { %1421 = vmatmul.mubr.msk.f32.gmra.mxu0 %vm51_vm1, %v46_v56 }
 0x35e   :  { %1423 = vmatprep.mubr.msk.f32.mxu0 %vm51_vm1, %v47_v57 }
 0x35f   :  { %v1567_v58 = vpop.eup %1566 }
 0x363   :  { %v1569_v59 = vpop.eup %1568 }
 0x364   :  { %v549_v60 = vpack.c.bf16 %v1569_v59, %v1567_v58  ;;  %v48_v58 = vld [vmem:[%s1929_s0 + $0xd8] sm:$0xff]  ;;  %v1410_v59 = vpop.f32.mrf.mxu0 }
 0x365   :  { %1424 = vmatmul.mubr.msk.f32.gmra.mxu0 %vm51_vm1, %v48_v58  ;;  %363 = vst.msk [vmem:[#allocation2 + $0x88] sm:$0xff] %vm345_vm3, %v1410_v59 }
 0x366   :  { %1455 = vmatmul.mubr.msk.bf16.vlgmr.msra.gmra.mxu1 %vm345_vm3, %v549_v60  ;;  %1486 = vmatprep.mubr.msk.bf16.mxu0 %vm1611_vm2, %v1610_v6  ;;  %v286_v60 = vpop.f32.mrf.mxu0 }
 0x367   :  { %1459 = vmatpush3.bf16.msra.mxu1 %v1669_v7  ;;  %1462 = vmatprep.mubr.msk.bf16.mxu1 %vm1611_vm2, %v1610_v6  ;;  %362 = vst.msk [vmem:[#allocation2 + $0x80] sm:$0xff] %vm345_vm3, %v286_v60 }
 0x368   :  { %1460 = vmatprep.subr.bf16.mxu1 %v1610_v6 }
 0x36b   :  { %1461 = vmatpush3.bf16.msra.mxu1 %v1678_v8 }
 0x36c   :  { %1466 = vmatprep.subr.bf16.mxu1 %v1610_v6 }
 0x426   :  { %v587_v2 = vpop.f32.mrf.mxu1 }
 0x427   :  { %v594_v3 = vadd.f32 %v587_v2, %v547_v1  ;;  %v701_v1 = vld [vmem:[#allocation2 + $0x78] sm:$0xff] }
 0x428   :  { %v1456_v4 = vpop.f32.mrf.mxu1 }
 0x429   :  { %1570 = vtanh.f32 %v594_v3 }
 0x42a   :  { %v590_v9 = vpop.f32.mrf.mxu1 }
 0x42b   :  { %v595_v10 = vadd.f32 %v590_v9, %v548_v5 }
 0x42c   :  { %v1457_v11 = vpop.f32.mrf.mxu1 }
 0x42d   :  { %1572 = vtanh.f32 %v595_v10  ;;  %v1413_v11 = vpop.f32.mrf.mxu0 }
 0x42e   :  { %365 = vst.msk [vmem:[#allocation2 + $0x98] sm:$0xff] %vm345_vm3, %v1413_v11 }
 0x435   :  { %v803_v36 = vld [vmem:[#allocation2 + $0x98] sm:$0xff] }
 0x436   :  { %v1571_v12 = vpop.eup %1570 }
 0x43a   :  { %v1573_v13 = vpop.eup %1572 }
 0x43b   :  { %v600_v14 = vpack.c.bf16 %v1573_v13, %v1571_v12  ;;  %v296_v12 = vpop.f32.mrf.mxu0 }
 0x43c   :  { %364 = vst.msk [vmem:[#allocation2 + $0x90] sm:$0xff] %vm345_vm3, %v296_v12 }
 0x43d   :  { %1463 = vmatmul.mubr.msk.bf16.vlgmr.msra.gmra.mxu1 %vm345_vm3, %v600_v14  ;;  %v1416_v13 = vpop.f32.mrf.mxu0 }
 0x43e   :  { %1467 = vmatpush3.bf16.msra.mxu1 %v1669_v7  ;;  %1470 = vmatprep.mubr.msk.bf16.mxu1 %vm1611_vm2, %v1610_v6  ;;  %367 = vst.msk [vmem:[#allocation2 + $0xa8] sm:$0xff] %vm345_vm3, %v1416_v13  ;;  %v1060_v13 = vld [vmem:[%s1931_s3 + $0x18] sm:$0xff] }
 0x43f   :  { %1468 = vmatprep.subr.bf16.mxu1 %v1610_v6  ;;  %v306_v14 = vpop.f32.mrf.mxu0 }
 0x440   :  { %366 = vst.msk [vmem:[#allocation2 + $0xa0] sm:$0xff] %vm345_vm3, %v306_v14  ;;  %v1059_v14 = vld [vmem:[%s1931_s3 + $0x10] sm:$0xff] }
 0x441   :  { %v1419_v15 = vpop.f32.mrf.mxu0 }
 0x442   :  { %1469 = vmatpush3.bf16.msra.mxu1 %v1678_v8  ;;  %369 = vst.msk [vmem:[#allocation2 + $0xb8] sm:$0xff] %vm345_vm3, %v1419_v15  ;;  %v1058_v15 = vld [vmem:[%s1931_s3 + $0x8] sm:$0xff] }
 0x443   :  { %1474 = vmatprep.subr.bf16.mxu1 %v1610_v6  ;;  %v316_v16 = vpop.f32.mrf.mxu0  ;;  %v802_v33 = vld [vmem:[#allocation2 + $0x90] sm:$0xff] }
 0x444   :  { %368 = vst.msk [vmem:[#allocation2 + $0xb0] sm:$0xff] %vm345_vm3, %v316_v16  ;;  %v1057_v16 = vld [vmem:[%s1931_s3] sm:$0xff] }
 0x445   :  { %v1422_v17 = vpop.f32.mrf.mxu0 }
 0x446   :  { %371 = vst.msk [vmem:[#allocation2 + $0xc8] sm:$0xff] %vm345_vm3, %v1422_v17  ;;  %v1143_v17 = vld [vmem:[%s1932_s4 + $0x8] sm:$0x3] }
 0x447   :  { %v326_v18 = vpop.f32.mrf.mxu0 }
 0x448   :  { %370 = vst.msk [vmem:[#allocation2 + $0xc0] sm:$0xff] %vm345_vm3, %v326_v18 }
 0x449   :  { %v905_v58 = vld [vmem:[#allocation2 + $0xb8] sm:$0xff] }
 0x44b   :  { %v904_v55 = vld [vmem:[#allocation2 + $0xb0] sm:$0xff] }
 0x4fd   :  { %v638_v20 = vpop.f32.mrf.mxu1 }
 0x4fe   :  { %v645_v21 = vadd.f32 %v638_v20, %v598_v19  ;;  %v1425_v19 = vpop.f32.mrf.mxu0 }
 0x4ff   :  { %v1464_v22 = vpop.f32.mrf.mxu1  ;;  %373 = vst.msk [vmem:[#allocation2 + $0xd8] sm:$0xff] %vm345_vm3, %v1425_v19 }
 0x500   :  { %1574 = vtanh.f32 %v645_v21  ;;  %v336_v20 = vpop.f32.mrf.mxu0  ;;  %v751_v22 = vld [vmem:[#allocation2 + $0x80] sm:$0xff] }
 0x501   :  { %v641_v24 = vpop.f32.mrf.mxu1  ;;  %372 = vst.msk [vmem:[#allocation2 + $0xd0] sm:$0xff] %vm345_vm3, %v336_v20 }
 0x502   :  { %v646_v25 = vadd.f32 %v641_v24, %v599_v23 }
 0x503   :  { %v1465_v26 = vpop.f32.mrf.mxu1 }
 0x504   :  { %1576 = vtanh.f32 %v646_v25  ;;  %v752_v25 = vld [vmem:[#allocation2 + $0x88] sm:$0xff] }
 0x508   :  { %v1006_v18 = vld [vmem:[#allocation2 + $0xd0] sm:$0xff] }
 0x50d   :  { %v1575_v27 = vpop.eup %1574 }
 0x511   :  { %v1577_v28 = vpop.eup %1576 }
 0x512   :  { %v651_v29 = vpack.c.bf16 %v1577_v28, %v1575_v27 }
 0x514   :  { %1471 = vmatmul.mubr.msk.bf16.vlgmr.msra.gmra.mxu1 %vm345_vm3, %v651_v29 }
 0x515   :  { %1475 = vmatpush3.bf16.msra.mxu1 %v1669_v7  ;;  %1478 = vmatprep.mubr.msk.bf16.mxu1 %vm1611_vm2, %v1610_v6 }
 0x516   :  { %1476 = vmatprep.subr.bf16.mxu1 %v1610_v6 }
 0x519   :  { %1477 = vmatpush3.bf16.msra.mxu1 %v1678_v8 }
 0x51a   :  { %1490 = vmatprep.subr.bf16.mxu1 %v1610_v6 }
 0x5d4   :  { %v689_v38 = vpop.f32.mrf.mxu1 }
 0x5d5   :  { %v696_v39 = vadd.f32 %v689_v38, %v649_v37 }
 0x5d6   :  { %v1472_v40 = vpop.f32.mrf.mxu1 }
 0x5d7   :  { %1578 = vtanh.f32 %v696_v39 }
 0x5d8   :  { %v692_v42 = vpop.f32.mrf.mxu1 }
 0x5d9   :  { %v697_v43 = vadd.f32 %v692_v42, %v650_v41 }
 0x5da   :  { %v1473_v44 = vpop.f32.mrf.mxu1 }
 0x5db   :  { %1580 = vtanh.f32 %v697_v43  ;;  %v853_v44 = vld [vmem:[#allocation2 + $0xa0] sm:$0xff] }
 0x5e4   :  { %v1579_v45 = vpop.eup %1578 }
 0x5e8   :  { %v1581_v46 = vpop.eup %1580 }
 0x5e9   :  { %v702_v47 = vpack.c.bf16 %v1581_v46, %v1579_v45 }
 0x5eb   :  { %1479 = vmatmul.mubr.msk.bf16.vlgmr.msra.gmra.mxu1 %vm345_vm3, %v702_v47  ;;  %v854_v47 = vld [vmem:[#allocation2 + $0xa8] sm:$0xff] }
 0x5ec   :  { %1491 = vmatpush3.bf16.msra.mxu1 %v1669_v7  ;;  %1494 = vmatprep.mubr.msk.bf16.mxu1 %vm1611_vm2, %v1610_v6 }
 0x5ed   :  { %1492 = vmatprep.subr.bf16.mxu1 %v1610_v6 }
 0x5f0   :  { %1493 = vmatpush3.bf16.msra.mxu1 %v1678_v8 }
 0x5f1   :  { %1506 = vmatprep.subr.bf16.mxu1 %v1610_v6 }
 0x6ab   :  { %v740_v62 = vpop.f32.mrf.mxu1 }
 0x6ac   :  { %v747_v63 = vadd.f32 %v740_v62, %v700_v61 }
 0x6ad   :  { %v1480_v0 = vpop.f32.mrf.mxu1 }
 0x6ae   :  { %1582 = vtanh.f32 %v747_v63 }
 0x6af   :  { %v743_v2 = vpop.f32.mrf.mxu1 }
 0x6b0   :  { %v748_v3 = vadd.f32 %v743_v2, %v701_v1  ;;  %v955_v1 = vld [vmem:[#allocation2 + $0xc0] sm:$0xff] }
 0x6b1   :  { %v1481_v4 = vpop.f32.mrf.mxu1 }
 0x6b2   :  { %1584 = vtanh.f32 %v748_v3 }
 0x6bb   :  { %v1583_v5 = vpop.eup %1582 }
 0x6bf   :  { %v1585_v9 = vpop.eup %1584 }
 0x6c0   :  { %v753_v10 = vpack.c.bf16 %v1585_v9, %v1583_v5 }
 0x6c2   :  { %1487 = vmatmul.mubr.msk.bf16.vlgmr.msra.gmra.mxu0 %vm345_vm3, %v753_v10 }
 0x6c3   :  { %1499 = vmatpush3.bf16.msra.mxu0 %v1669_v7  ;;  %1502 = vmatprep.mubr.msk.bf16.mxu0 %vm1611_vm2, %v1610_v6 }
 0x6c4   :  { %1500 = vmatprep.subr.bf16.mxu0 %v1610_v6 }
 0x6c7   :  { %1501 = vmatpush3.bf16.msra.mxu0 %v1678_v8 }
 0x6c8   :  { %1514 = vmatprep.subr.bf16.mxu0 %v1610_v6 }
 0x782   :  { %v791_v21 = vpop.f32.mrf.mxu0 }
 0x783   :  { %v798_v23 = vadd.f32 %v791_v21, %v751_v22  ;;  %v1007_v22 = vld [vmem:[#allocation2 + $0xd8] sm:$0xff] }
 0x784   :  { %v1488_v24 = vpop.f32.mrf.mxu0 }
 0x785   :  { %1586 = vtanh.f32 %v798_v23 }
 0x786   :  { %v794_v26 = vpop.f32.mrf.mxu0 }
 0x787   :  { %v799_v27 = vadd.f32 %v794_v26, %v752_v25 }
 0x788   :  { %v1489_v28 = vpop.f32.mrf.mxu0 }
 0x789   :  { %1588 = vtanh.f32 %v799_v27  ;;  %v1142_v27 = vld [vmem:[%s1932_s4] sm:$0xff]  ;;  %v1240_v28 = vpop.permute.xlu1 %1239  ;;  %s1613_s4 = smov 126  }
 0x792   :  { %v1587_v29 = vpop.eup %1586 }
 0x796   :  { %v1589_v30 = vpop.eup %1588 }
 0x797   :  { %v804_v31 = vpack.c.bf16 %v1589_v30, %v1587_v29 }
 0x799   :  { %1495 = vmatmul.mubr.msk.bf16.vlgmr.msra.gmra.mxu1 %vm345_vm3, %v804_v31 }
 0x79a   :  { %1507 = vmatpush3.bf16.msra.mxu1 %v1669_v7  ;;  %1510 = vmatprep.mubr.msk.bf16.mxu1 %vm1611_vm2, %v1610_v6 }
 0x79b   :  { %1508 = vmatprep.subr.bf16.mxu1 %v1610_v6 }
 0x79e   :  { %1509 = vmatpush3.bf16.msra.mxu1 %v1678_v8 }
 0x79f   :  { %1522 = vmatprep.subr.bf16.mxu1 %v1610_v6 }
 0x859   :  { %v842_v32 = vpop.f32.mrf.mxu1 }
 0x85a   :  { %v849_v34 = vadd.f32 %v842_v32, %v802_v33 }
 0x85b   :  { %v1496_v35 = vpop.f32.mrf.mxu1 }
 0x85c   :  { %1590 = vtanh.f32 %v849_v34 }
 0x85d   :  { %v845_v37 = vpop.f32.mrf.mxu1 }
 0x85e   :  { %v850_v38 = vadd.f32 %v845_v37, %v803_v36 }
 0x85f   :  { %v1497_v39 = vpop.f32.mrf.mxu1 }
 0x860   :  { %1592 = vtanh.f32 %v850_v38 }
 0x869   :  { %v1591_v40 = vpop.eup %1590 }
 0x86d   :  { %v1593_v41 = vpop.eup %1592 }
 0x86e   :  { %v855_v42 = vpack.c.bf16 %v1593_v41, %v1591_v40 }
 0x870   :  { %1503 = vmatmul.mubr.msk.bf16.vlgmr.msra.gmra.mxu0 %vm345_vm3, %v855_v42 }
 0x871   :  { %1515 = vmatpush3.bf16.msra.mxu0 %v1669_v7  ;;  %1518 = vmatprep.mubr.msk.bf16.mxu0 %vm1611_vm2, %v1610_v6 }
 0x872   :  { %1516 = vmatprep.subr.bf16.mxu0 %v1610_v6 }
 0x875   :  { %1517 = vmatpush3.bf16.msra.mxu0 %v1678_v8 }
 0x876   :  { %1530 = vmatprep.subr.mxu0 %v1060_v13 }
 0x930   :  { %v893_v43 = vpop.f32.mrf.mxu0 }
 0x931   :  { %v900_v45 = vadd.f32 %v893_v43, %v853_v44 }
 0x932   :  { %v1504_v46 = vpop.f32.mrf.mxu0 }
 0x933   :  { %1594 = vtanh.f32 %v900_v45 }
 0x934   :  { %v896_v48 = vpop.f32.mrf.mxu0 }
 0x935   :  { %v901_v49 = vadd.f32 %v896_v48, %v854_v47 }
 0x936   :  { %v1505_v50 = vpop.f32.mrf.mxu0 }
 0x937   :  { %1596 = vtanh.f32 %v901_v49 }
 0x940   :  { %v1595_v51 = vpop.eup %1594 }
 0x944   :  { %v1597_v52 = vpop.eup %1596 }
 0x945   :  { %v906_v53 = vpack.c.bf16 %v1597_v52, %v1595_v51 }
 0x947   :  { %1511 = vmatmul.mubr.msk.bf16.vlgmr.msra.gmra.mxu1 %vm345_vm3, %v906_v53 }
 0x948   :  { %1523 = vmatpush3.bf16.msra.mxu1 %v1669_v7  ;;  %1526 = vmatprep.mubr.msk.bf16.mxu1 %vm1611_vm2, %v1610_v6 }
 0x949   :  { %1524 = vmatprep.subr.bf16.mxu1 %v1610_v6 }
 0x94c   :  { %1525 = vmatpush3.bf16.msra.mxu1 %v1678_v8  ;;  %v956_v8 = vld [vmem:[#allocation2 + $0xc8] sm:$0xff] }
 0xa07   :  { %v944_v54 = vpop.f32.mrf.mxu1 }
 0xa08   :  { %v951_v56 = vadd.f32 %v944_v54, %v904_v55 }
 0xa09   :  { %v1512_v57 = vpop.f32.mrf.mxu1 }
 0xa0a   :  { %1598 = vtanh.f32 %v951_v56 }
 0xa0b   :  { %v947_v59 = vpop.f32.mrf.mxu1 }
 0xa0c   :  { %v952_v60 = vadd.f32 %v947_v59, %v905_v58 }
 0xa0d   :  { %v1513_v61 = vpop.f32.mrf.mxu1 }
 0xa0e   :  { %1600 = vtanh.f32 %v952_v60 }
 0xa17   :  { %v1599_v62 = vpop.eup %1598 }
 0xa1b   :  { %v1601_v63 = vpop.eup %1600 }
 0xa1c   :  { %v957_v7 = vpack.c.bf16 %v1601_v63, %v1599_v62 }
 0xa1e   :  { %1519 = vmatmul.mubr.msk.bf16.vlgmr.msra.gmra.mxu0 %vm345_vm3, %v957_v7 }
 0xa1f   :  { %1531 = vmatpush3.msra.mxu0 %v1060_v13 }
 0xa20   :  { %1532 = vmatprep.subr.mxu0 %v1059_v14 }
 0xa21   :  { %1533 = vmatpush3.msra.mxu0 %v1059_v14 }
 0xa22   :  { %1534 = vmatprep.subr.mxu0 %v1058_v15 }
 0xa23   :  { %1535 = vmatpush3.msra.mxu0 %v1058_v15 }
 0xa24   :  { %1536 = vmatprep.subr.mxu0 %v1057_v16 }
 0xa25   :  { %1537 = vmatpush3.msra.mxu0 %v1057_v16 }
 0xa26   :  { %1541 = vmatprep.subr.msk.mxu0 %vm1151_vm4, %v1143_v17 }
 0xade   :  { %v995_v0 = vpop.f32.mrf.mxu0 }
 0xadf   :  { %v1002_v2 = vadd.f32 %v995_v0, %v955_v1 }
 0xae0   :  { %v1520_v3 = vpop.f32.mrf.mxu0 }
 0xae1   :  { %1602 = vtanh.f32 %v1002_v2 }
 0xae2   :  { %v998_v4 = vpop.f32.mrf.mxu0 }
 0xae3   :  { %v1003_v5 = vadd.f32 %v998_v4, %v956_v8 }
 0xae4   :  { %v1521_v9 = vpop.f32.mrf.mxu0 }
 0xae5   :  { %1604 = vtanh.f32 %v1003_v5 }
 0xaee   :  { %v1603_v10 = vpop.eup %1602 }
 0xaf2   :  { %v1605_v11 = vpop.eup %1604 }
 0xaf3   :  { %v1008_v12 = vpack.c.bf16 %v1605_v11, %v1603_v10 }
 0xaf5   :  { %1527 = vmatmul.mubr.msk.bf16.vlgmr.msra.gmra.mxu1 %vm345_vm3, %v1008_v12 }
 0xbb5   :  { %v1046_v19 = vpop.f32.mrf.mxu1 }
 0xbb6   :  { %v1053_v20 = vadd.f32 %v1046_v19, %v1006_v18 }
 0xbb7   :  { %v1528_v21 = vpop.f32.mrf.mxu1 }
 0xbb8   :  { %1606 = vtanh.f32 %v1053_v20 }
 0xbb9   :  { %v1049_v23 = vpop.f32.mrf.mxu1 }
 0xbba   :  { %v1054_v24 = vadd.f32 %v1049_v23, %v1007_v22 }
 0xbbb   :  { %v1529_v25 = vpop.f32.mrf.mxu1 }
 0xbbc   :  { %1608 = vtanh.f32 %v1054_v24 }
 0xbc5   :  { %v1607_v26 = vpop.eup %1606 }
 0xbc6   :  { %1538 = vmatprep.mubr.msk.f32.mxu0 %vm345_vm3, %v1607_v26 }
 0xbc9   :  { %v1609_v6 = vpop.eup %1608 }
 0xbca   :  { %1539 = vmatmul.mubr.msk.f32.vlgmr.msra.gmra.mxu0 %vm345_vm3, %v1609_v6 }
 0xbcb   :  { %1542 = vmatpush3.msk.msra.mxu0 %vm1151_vm4, %v1143_v17 }
 0xbcc   :  { %1543 = vmatprep.subr.mxu0 %v1142_v27 }
 0xbcd   :  { %1544 = vmatpush3.msra.mxu0 %v1142_v27 }
 0xc8a   :  { %v1540_v29 = vpop.f32.mrf.mxu0 }
 0xc8b   :  { %v1244_v30 = vsel %vm1144_vm5, %v1540_v29, %v1240_v28 }
 0xc8c   :  { %1247 = vst.msk [vmem:[%s1933_s5 + $0x8] sm:$0xff] %vm1245_vm6, %v1244_v30  ;;  %v1133_v31 = vpop.f32.mrf.mxu0 }
 0xc8d   :  { %1545 = vmatprep.mubr.msk.f32.mxu0 %vm1144_vm5, %v1133_v31 }
 0xc8e   :  { %1546 = vmatmul.mubr.msk.f32.vlgmr.msra.gmra.mxu0 %vm1144_vm5, %v1540_v29 }
 0xd4e   :  { %v1547_v32 = vpop.f32.mrf.mxu0 }
 0xd4f   :  { %1231 = vrot.lane.b32.xlu0 %v1547_v32, %s1613_s4 }
 0xd50   :  { %v1221_v33 = vpop.f32.mrf.mxu0 }
 0xdc1   :  { %v1232_v34 = vpop.permute.xlu0 %1231 }
 0xdc2   :  { %v1234_v35 = vadd.f32 %v1232_v34, %v1221_v33 }
 0xdc4   :  { %1237 = vrot.lane.b32.xlu0 %v1234_v35, %s1612_s8 }
 0xe36   :  { %v1238_v36 = vpop.permute.xlu0 %1237 }
 0xe37   :  { %v1243_v37 = vsel %vm1144_vm5, %v1133_v31, %v1238_v36 }
 0xe38   :  { %1246 = vst.msk [vmem:[%s1933_s5] sm:$0xff] %vm1245_vm6, %v1243_v37 }

</bundles_post_ra>
